<compile_context>
chip_gen: v7x
topology: tpu7x:2x2x1
jax: 0.10.0
libtpu: 0.0.40
codegen_flags: <defaults>
</compile_context>

<pallas_src>
import functools
import math

import jax
import jax.numpy as jnp
import numpy as np
from jax.experimental import pallas as pl
from jax.experimental.pallas import tpu as pltpu


def varcor_attn_kernel(q_ref, k_ref, v_ref, p2_ref, o_ref, *, bc):
    """One (b_blk, D, T) slab of batch elements per grid step.

    q_ref, k_ref, v_ref : (b_blk, D, T) VMEM blocks, native dtype
    p2_ref              : (D, D) f32 block  = para[0] * scale / N * para2
    o_ref               : (b_blk, D, T) output block
    bc                  : static inner batch-chunk size (bounds vreg pressure)
    """
    b_blk, D, T = q_ref.shape
    nc = b_blk // bc
    p2 = p2_ref[...]                                        # (D, D) f32, loop invariant

    @pl.loop(0, nc)
    def _(c):
        off = pl.multiple_of(c * bc, bc)

        # DC bins of rfft(q)/rfft(k) == row sums over time, f32 accumulation.
        # (Only this bc-sized chunk is promoted, never the whole slab.)
        sq = jnp.sum(q_ref[pl.ds(off, bc)].astype(jnp.float32), axis=-1)   # (bc, D)
        sk = jnp.sum(k_ref[pl.ds(off, bc)].astype(jnp.float32), axis=-1)   # (bc, D)

        # logits[b,i,j] = (para[0]*scale/N) * para2[i,j] * sq[b,i] * sk[b,j]
        logits = (sq[:, :, None] * sk[:, None, :]) * p2[None, :, :]        # (bc, D, D)

        # softmax over the key-variable axis (f32).
        m = jnp.max(logits, axis=-1, keepdims=True)
        e = jnp.exp(logits - m)
        denom = jnp.sum(e, axis=-1, keepdims=True)
        attn = e * pl.reciprocal(denom, approx=True)        # EUP slot, ~free here

        # out[b,s,t] = sum_d attn[b,s,d] * v[b,d,t]
        # D (= enc_in) is tiny, so an unrolled VPU FMA loop over d beats issuing
        # bc serial DxD MXU matmuls; v rows are read straight from the VMEM ref
        # in native dtype and only (bc, 1, T) slices are promoted to f32.
        acc = jnp.zeros((bc, D, T), jnp.float32)
        for d in range(D):                                   # static unroll, D small
            vd = v_ref[pl.ds(off, bc), pl.ds(d, 1), :].astype(jnp.float32)  # (bc,1,T)
            acc = acc + attn[:, :, d:d + 1] * vd
        o_ref[pl.ds(off, bc)] = acc.astype(o_ref.dtype)


def _largest_divisor_leq(n, cap):
    cap = int(max(1, min(n, cap)))
    for d in range(cap, 0, -1):
        if n % d == 0:
            return d
    return 1


def _tpu_tuning():
    """(block_budget_bytes, vmem_limit_bytes, two_core_hint) per TPU generation."""
    vmem_cap = None
    try:
        info = pltpu.get_tpu_info()
        vmem_cap = int(getattr(info, "vmem_capacity_bytes", 0)) or None
    except Exception:
        vmem_cap = None
    detected = vmem_cap is not None
    if vmem_cap is None:
        vmem_cap = 64 << 20                       # conservative (v7x-sized) fallback
    small_vmem = vmem_cap <= (64 << 20)
    # v5e/v6e (128 MiB physical): ~64 MiB of block buffers, ~80 MiB scoped limit.
    # v7x    (64 MiB physical):   ~24 MiB of block buffers, ~40 MiB scoped limit.
    block_budget = min(vmem_cap // 2, (24 << 20) if small_vmem else (64 << 20))
    vmem_limit = int(min(block_budget + (16 << 20), (vmem_cap * 3) // 4))
    two_core = False
    try:
        two_core = "v7" in jax.devices()[0].device_kind.lower()
    except Exception:
        pass
    two_core = two_core or (detected and small_vmem)
    return block_budget, vmem_limit, two_core


def _choose_b_blk(B, D, T, itemsize, block_budget, two_core):
    """Batch elements per grid step: biggest divisor of B that fits the budget.

    Accounting uses the ACTUAL input itemsize (no in-kernel full-slab f32 copies):
    double-buffered q, k, v input blocks + double-buffered output block.
    Only two-TensorCore chips (v7x) keep >= 4 grid steps so each core still gets
    >= 2 iterations and the double buffer can overlap DMA with compute; on
    single-core v5e/v6e a single big block is preferred.
    """
    per_b = 2 * 4 * D * T * int(itemsize)
    cap = max(1, block_budget // max(per_b, 1))
    if two_core and B >= 4:
        cap = min(cap, B // 4)
    return _largest_divisor_leq(B, cap)


def varcor_attention(queries, keys, values, para, para2,
                     attn_mask=None, scale=None, b_blk=None):
    """Pallas implementation of VarCorAttention.forward (output_attention=False).

    `attn_mask` is accepted for signature parity; the reference forward never
    applies it (nor dropout) on this code path.
    """
    B, D, T = queries.shape
    F = T // 2 + 1
    N = 2 * (F - 1)                                 # torch.fft.irfft default length
    sc = scale if scale is not None else 1.0 / math.sqrt(T)

    # Fold the scalar coefficient para[0] * scale / N into para2 on the host:
    # one (D, D) operand, no per-step scalar stream inside the kernel.
    # (Assumes para is non-empty, i.e. T >= 18 -- same constraint as the module.)
    p2_scaled = para2.astype(jnp.float32) * (para[0].astype(jnp.float32) * sc / N)

    block_budget, vmem_limit, two_core = _tpu_tuning()
    if b_blk is None:
        b_blk = _choose_b_blk(B, D, T, jnp.dtype(queries.dtype).itemsize,
                              block_budget, two_core)
    else:
        b_blk = _largest_divisor_leq(B, b_blk)      # must divide B (no host padding)
    steps = B // b_blk

    # Inner batch-chunk: bounds the (bc,D,D)/(bc,D,T) f32 softmax/FMA intermediates
    # (~24 vregs for the accumulator) while the DMA'd q/k/v/out slab stays large.
    bc_cap = max(1, min(8, (24 * 1024) // max(D * T, 1)))
    bc = _largest_divisor_leq(b_blk, bc_cap)

    # TODO(synk): lane-dense (unmasked) vst / full-rate DMA needs T to be a
    # multiple of 128; pad T at the data producer rather than per-call here.
    out = pl.pallas_call(
        functools.partial(varcor_attn_kernel, bc=bc),
        out_shape=jax.ShapeDtypeStruct((B, D, T), values.dtype),
        grid=(steps,),
        in_specs=[
            pl.BlockSpec((b_blk, D, T), lambda b: (b, 0, 0)),   # queries
            pl.BlockSpec((b_blk, D, T), lambda b: (b, 0, 0)),   # keys
            pl.BlockSpec((b_blk, D, T), lambda b: (b, 0, 0)),   # values
            pl.BlockSpec((D, D), lambda b: (0, 0)),             # scaled para2
        ],
        out_specs=pl.BlockSpec((b_blk, D, T), lambda b: (b, 0, 0)),
        compiler_params=pltpu.CompilerParams(
            dimension_semantics=("parallel",),
            vmem_limit_bytes=int(vmem_limit)),
    )(queries, keys, values, p2_scaled)

    # forward returns (V, None) when output_attention=False.
    return out, None


def reference_forward(queries, keys, values, para, para2, scale=None):
    """Pure-JAX faithful replication of the torch code path (FFT based)."""
    B, D, T = queries.shape
    q_fft = jnp.fft.rfft(queries, axis=-1)[:, :, None, :]   # (B, D, 1, F)
    k_fft = jnp.fft.rfft(keys, axis=-1)[:, :, None, :]      # (B, D, 1, F)
    F = q_fft.shape[-1]
    n_roll = F // 10
    # In test_2 the "rolled" spectra are all zeros (size-1 dim sliced with :-10).
    rolled_k = [k_fft] + [jnp.zeros_like(k_fft)] * (n_roll - 1)
    rolled_q = [q_fft] * n_roll
    k_out = jnp.concatenate(rolled_k, axis=2)[:, None]       # (B, 1, D, n, F)
    k_out = para.reshape(1, 1, 1, n_roll, 1) * k_out
    q_out = jnp.concatenate(rolled_q, axis=2)[:, :, None]    # (B, D, 1, n, F)
    corr = jnp.sum(k_out * q_out, axis=3)                    # (B, D, D, F)
    corr = corr * para2.reshape(1, D, D, 1)
    corr = jnp.fft.irfft(corr, axis=-1)                      # (B, D, D, 2*(F-1))
    corr = corr.mean(axis=-1)                                # (B, D, D)
    sc = scale if scale is not None else 1.0 / math.sqrt(T)
    attn = jax.nn.softmax(corr * sc, axis=-1)
    V = jnp.einsum('bsd,bde->bse', attn, values)
    return V


if __name__ == "__main__":
    # Small shapes consistent with the module: B=2, enc_in=D=8, T=dmodel=40
    # (so para has (dmodel//2+1)//10 = 2 elements, as in __init__ with dmodel=T).
    B, D, T = 2, 8, 40
    key = jax.random.PRNGKey(0)
    kq, kk, kv, kp1, kp2 = jax.random.split(key, 5)

    queries = jax.random.normal(kq, (B, D, T), dtype=jnp.float32)
    keys_ = jax.random.normal(kk, (B, D, T), dtype=jnp.float32)
    values = jax.random.normal(kv, (B, D, T), dtype=jnp.float32)

    # Deterministic "torch.rand"-style parameters.
    n_para = (T // 2 + 1) // 10                      # (dmodel//2+1)//10 with dmodel=T
    para = jax.random.uniform(kp1, (n_para,), dtype=jnp.float32)
    para2 = jax.random.uniform(kp2, (D, D), dtype=jnp.float32)

    V, attn = varcor_attention(queries, keys_, values, para, para2)
    V = jax.block_until_ready(V)

    # Sanity check against a faithful (FFT-based) pure-JAX reference.
    V_ref = jax.block_until_ready(
        reference_forward(queries, keys_, values, para, para2))
    np.testing.assert_allclose(np.asarray(V), np.asarray(V_ref),
                               rtol=5e-3, atol=5e-3)

    print("KERNEL_OK")
</pallas_src>

<mosaic_0001>
module attributes {stable_mosaic.version = 11 : i64} {
  func.func @varcor_attn_kernel(%arg0: i32, %arg1: memref<2x8x40xf32, #tpu.memory_space<vmem>>, %arg2: memref<2x8x40xf32, #tpu.memory_space<vmem>>, %arg3: memref<2x8x40xf32, #tpu.memory_space<vmem>>, %arg4: memref<8x8xf32, #tpu.memory_space<vmem>>, %arg5: memref<2x8x40xf32, #tpu.memory_space<vmem>>) attributes {dimension_semantics = [#tpu.dimension_semantics<parallel>], iteration_bounds = array<i64: 1>, scalar_prefetch = 0 : i64, scratch_operands = 0 : i64, tpu.core_type = #tpu.core_type<tc>, window_params = [{transform_indices = @transform_0, window_bounds = array<i64: 2, 8, 40>}, {transform_indices = @transform_1, window_bounds = array<i64: 2, 8, 40>}, {transform_indices = @transform_2, window_bounds = array<i64: 2, 8, 40>}, {pipeline_mode = #tpu.pipeline_mode<synchronous>, transform_indices = @transform_3, window_bounds = array<i64: 8, 8>}, {transform_indices = @transform_4, window_bounds = array<i64: 2, 8, 40>}]} {
    %c0 = arith.constant 0 : index
    %c0_0 = arith.constant 0 : index
    %0 = vector.load %arg4[%c0, %c0_0] : memref<8x8xf32, #tpu.memory_space<vmem>>, vector<8x8xf32>
    %c0_i32 = arith.constant 0 : i32
    %c1_i32 = arith.constant 1 : i32
    %1 = arith.muli %c0_i32, %c1_i32 : i32
    %c0_i32_1 = arith.constant 0 : i32
    %2 = arith.addi %c0_i32_1, %1 : i32
    %c2_i32 = arith.constant 2 : i32
    %3 = arith.muli %2, %c2_i32 : i32
    %4 = tpu.assume_multiple %3, 2 : i32
    %5 = arith.index_cast %4 : i32 to index
    %c0_2 = arith.constant 0 : index
    %c0_3 = arith.constant 0 : index
    %6 = vector.load %arg1[%5, %c0_2, %c0_3] : memref<2x8x40xf32, #tpu.memory_space<vmem>>, vector<2x8x40xf32>
    %cst = arith.constant dense<0.000000e+00> : vector<2x8xf32>
    %7 = vector.multi_reduction <add>, %6, %cst [2] : vector<2x8x40xf32> to vector<2x8xf32>
    %8 = arith.index_cast %4 : i32 to index
    %c0_4 = arith.constant 0 : index
    %c0_5 = arith.constant 0 : index
    %9 = vector.load %arg2[%8, %c0_4, %c0_5] : memref<2x8x40xf32, #tpu.memory_space<vmem>>, vector<2x8x40xf32>
    %cst_6 = arith.constant dense<0.000000e+00> : vector<2x8xf32>
    %10 = vector.multi_reduction <add>, %9, %cst_6 [2] : vector<2x8x40xf32> to vector<2x8xf32>
    %11 = vector.shape_cast %7 : vector<2x8xf32> to vector<2x8x1xf32>
    %12 = vector.shape_cast %10 : vector<2x8xf32> to vector<2x1x8xf32>
    %13 = vector.broadcast %11 : vector<2x8x1xf32> to vector<2x8x8xf32>
    %14 = vector.broadcast %12 : vector<2x1x8xf32> to vector<2x8x8xf32>
    %15 = arith.mulf %13, %14 : vector<2x8x8xf32>
    %16 = vector.shape_cast %0 : vector<8x8xf32> to vector<1x8x8xf32>
    %17 = vector.broadcast %16 : vector<1x8x8xf32> to vector<2x8x8xf32>
    %18 = arith.mulf %15, %17 : vector<2x8x8xf32>
    %cst_7 = arith.constant dense<0xFF800000> : vector<2x8xf32>
    %19 = vector.multi_reduction <maximumf>, %18, %cst_7 [2] : vector<2x8x8xf32> to vector<2x8xf32>
    %20 = vector.shape_cast %19 : vector<2x8xf32> to vector<2x8x1xf32>
    %21 = vector.broadcast %20 : vector<2x8x1xf32> to vector<2x8x8xf32>
    %22 = arith.subf %18, %21 : vector<2x8x8xf32>
    %23 = math.exp %22 : vector<2x8x8xf32>
    %cst_8 = arith.constant dense<0.000000e+00> : vector<2x8xf32>
    %24 = vector.multi_reduction <add>, %23, %cst_8 [2] : vector<2x8x8xf32> to vector<2x8xf32>
    %25 = vector.shape_cast %24 : vector<2x8xf32> to vector<2x8x1xf32>
    %26 = tpu.reciprocal %25 {approx = true} : vector<2x8x1xf32> -> vector<2x8x1xf32>
    %27 = vector.broadcast %26 : vector<2x8x1xf32> to vector<2x8x8xf32>
    %28 = arith.mulf %23, %27 : vector<2x8x8xf32>
    %cst_9 = arith.constant 0.000000e+00 : f32
    %29 = vector.broadcast %cst_9 : f32 to vector<2x8x40xf32>
    %30 = arith.index_cast %4 : i32 to index
    %c0_10 = arith.constant 0 : index
    %c0_11 = arith.constant 0 : index
    %31 = vector.load %arg3[%30, %c0_10, %c0_11] : memref<2x8x40xf32, #tpu.memory_space<vmem>>, vector<2x1x40xf32>
    %32 = vector.extract_strided_slice %28 {offsets = [0, 0, 0], sizes = [2, 8, 1], strides = [1, 1, 1]} : vector<2x8x8xf32> to vector<2x8x1xf32>
    %33 = vector.broadcast %32 : vector<2x8x1xf32> to vector<2x8x40xf32>
    %34 = vector.broadcast %31 : vector<2x1x40xf32> to vector<2x8x40xf32>
    %35 = arith.mulf %33, %34 : vector<2x8x40xf32>
    %36 = arith.addf %29, %35 : vector<2x8x40xf32>
    %37 = arith.index_cast %4 : i32 to index
    %c1 = arith.constant 1 : index
    %c0_12 = arith.constant 0 : index
    %38 = vector.load %arg3[%37, %c1, %c0_12] : memref<2x8x40xf32, #tpu.memory_space<vmem>>, vector<2x1x40xf32>
    %39 = vector.extract_strided_slice %28 {offsets = [0, 0, 1], sizes = [2, 8, 1], strides = [1, 1, 1]} : vector<2x8x8xf32> to vector<2x8x1xf32>
    %40 = vector.broadcast %39 : vector<2x8x1xf32> to vector<2x8x40xf32>
    %41 = vector.broadcast %38 : vector<2x1x40xf32> to vector<2x8x40xf32>
    %42 = arith.mulf %40, %41 : vector<2x8x40xf32>
    %43 = arith.addf %36, %42 : vector<2x8x40xf32>
    %44 = arith.index_cast %4 : i32 to index
    %c2 = arith.constant 2 : index
    %c0_13 = arith.constant 0 : index
    %45 = vector.load %arg3[%44, %c2, %c0_13] : memref<2x8x40xf32, #tpu.memory_space<vmem>>, vector<2x1x40xf32>
    %46 = vector.extract_strided_slice %28 {offsets = [0, 0, 2], sizes = [2, 8, 1], strides = [1, 1, 1]} : vector<2x8x8xf32> to vector<2x8x1xf32>
    %47 = vector.broadcast %46 : vector<2x8x1xf32> to vector<2x8x40xf32>
    %48 = vector.broadcast %45 : vector<2x1x40xf32> to vector<2x8x40xf32>
    %49 = arith.mulf %47, %48 : vector<2x8x40xf32>
    %50 = arith.addf %43, %49 : vector<2x8x40xf32>
    %51 = arith.index_cast %4 : i32 to index
    %c3 = arith.constant 3 : index
    %c0_14 = arith.constant 0 : index
    %52 = vector.load %arg3[%51, %c3, %c0_14] : memref<2x8x40xf32, #tpu.memory_space<vmem>>, vector<2x1x40xf32>
    %53 = vector.extract_strided_slice %28 {offsets = [0, 0, 3], sizes = [2, 8, 1], strides = [1, 1, 1]} : vector<2x8x8xf32> to vector<2x8x1xf32>
    %54 = vector.broadcast %53 : vector<2x8x1xf32> to vector<2x8x40xf32>
    %55 = vector.broadcast %52 : vector<2x1x40xf32> to vector<2x8x40xf32>
    %56 = arith.mulf %54, %55 : vector<2x8x40xf32>
    %57 = arith.addf %50, %56 : vector<2x8x40xf32>
    %58 = arith.index_cast %4 : i32 to index
    %c4 = arith.constant 4 : index
    %c0_15 = arith.constant 0 : index
    %59 = vector.load %arg3[%58, %c4, %c0_15] : memref<2x8x40xf32, #tpu.memory_space<vmem>>, vector<2x1x40xf32>
    %60 = vector.extract_strided_slice %28 {offsets = [0, 0, 4], sizes = [2, 8, 1], strides = [1, 1, 1]} : vector<2x8x8xf32> to vector<2x8x1xf32>
    %61 = vector.broadcast %60 : vector<2x8x1xf32> to vector<2x8x40xf32>
    %62 = vector.broadcast %59 : vector<2x1x40xf32> to vector<2x8x40xf32>
    %63 = arith.mulf %61, %62 : vector<2x8x40xf32>
    %64 = arith.addf %57, %63 : vector<2x8x40xf32>
    %65 = arith.index_cast %4 : i32 to index
    %c5 = arith.constant 5 : index
    %c0_16 = arith.constant 0 : index
    %66 = vector.load %arg3[%65, %c5, %c0_16] : memref<2x8x40xf32, #tpu.memory_space<vmem>>, vector<2x1x40xf32>
    %67 = vector.extract_strided_slice %28 {offsets = [0, 0, 5], sizes = [2, 8, 1], strides = [1, 1, 1]} : vector<2x8x8xf32> to vector<2x8x1xf32>
    %68 = vector.broadcast %67 : vector<2x8x1xf32> to vector<2x8x40xf32>
    %69 = vector.broadcast %66 : vector<2x1x40xf32> to vector<2x8x40xf32>
    %70 = arith.mulf %68, %69 : vector<2x8x40xf32>
    %71 = arith.addf %64, %70 : vector<2x8x40xf32>
    %72 = arith.index_cast %4 : i32 to index
    %c6 = arith.constant 6 : index
    %c0_17 = arith.constant 0 : index
    %73 = vector.load %arg3[%72, %c6, %c0_17] : memref<2x8x40xf32, #tpu.memory_space<vmem>>, vector<2x1x40xf32>
    %74 = vector.extract_strided_slice %28 {offsets = [0, 0, 6], sizes = [2, 8, 1], strides = [1, 1, 1]} : vector<2x8x8xf32> to vector<2x8x1xf32>
    %75 = vector.broadcast %74 : vector<2x8x1xf32> to vector<2x8x40xf32>
    %76 = vector.broadcast %73 : vector<2x1x40xf32> to vector<2x8x40xf32>
    %77 = arith.mulf %75, %76 : vector<2x8x40xf32>
    %78 = arith.addf %71, %77 : vector<2x8x40xf32>
    %79 = arith.index_cast %4 : i32 to index
    %c7 = arith.constant 7 : index
    %c0_18 = arith.constant 0 : index
    %80 = vector.load %arg3[%79, %c7, %c0_18] : memref<2x8x40xf32, #tpu.memory_space<vmem>>, vector<2x1x40xf32>
    %81 = vector.extract_strided_slice %28 {offsets = [0, 0, 7], sizes = [2, 8, 1], strides = [1, 1, 1]} : vector<2x8x8xf32> to vector<2x8x1xf32>
    %82 = vector.broadcast %81 : vector<2x8x1xf32> to vector<2x8x40xf32>
    %83 = vector.broadcast %80 : vector<2x1x40xf32> to vector<2x8x40xf32>
    %84 = arith.mulf %82, %83 : vector<2x8x40xf32>
    %85 = arith.addf %78, %84 : vector<2x8x40xf32>
    %86 = arith.index_cast %4 : i32 to index
    %c0_19 = arith.constant 0 : index
    %c0_20 = arith.constant 0 : index
    %87 = vector.load %arg5[%86, %c0_19, %c0_20] : memref<2x8x40xf32, #tpu.memory_space<vmem>>, vector<2x8x40xf32>
    tpu.vector_store %arg5[%86, %c0_19, %c0_20], %85 {strides = array<i32>} : memref<2x8x40xf32, #tpu.memory_space<vmem>>, vector<2x8x40xf32>,
    %c1_i32_21 = arith.constant 1 : i32
    return
  }
  func.func @transform_0(%arg0: i32) -> (i32, i32, i32) {
    %c0_i32 = arith.constant 0 : i32
    %c0_i32_0 = arith.constant 0 : i32
    %c0_i32_1 = arith.constant 0 : i32
    return %arg0, %c0_i32, %c0_i32_0 : i32, i32, i32
  }
  func.func @transform_1(%arg0: i32) -> (i32, i32, i32) {
    %c0_i32 = arith.constant 0 : i32
    %c0_i32_0 = arith.constant 0 : i32
    %c0_i32_1 = arith.constant 0 : i32
    return %arg0, %c0_i32, %c0_i32_0 : i32, i32, i32
  }
  func.func @transform_2(%arg0: i32) -> (i32, i32, i32) {
    %c0_i32 = arith.constant 0 : i32
    %c0_i32_0 = arith.constant 0 : i32
    %c0_i32_1 = arith.constant 0 : i32
    return %arg0, %c0_i32, %c0_i32_0 : i32, i32, i32
  }
  func.func @transform_3(%arg0: i32) -> (i32, i32) {
    %c0_i32 = arith.constant 0 : i32
    %c0_i32_0 = arith.constant 0 : i32
    %c0_i32_1 = arith.constant 0 : i32
    return %c0_i32, %c0_i32_0 : i32, i32
  }
  func.func @transform_4(%arg0: i32) -> (i32, i32, i32) {
    %c0_i32 = arith.constant 0 : i32
    %c0_i32_0 = arith.constant 0 : i32
    %c0_i32_1 = arith.constant 0 : i32
    return %arg0, %c0_i32, %c0_i32_0 : i32, i32, i32
  }
}

</mosaic_0001>

<bundles_post_ra>
// kernel: tpu_custom_call.1
= control target key start
LH: loop header
LB: loop body
LE: loop exit
PB: predicated region body
PF: predicated region fallthrough
CT: control target
= control target key end

     0   :  { %9 = vsyncpa [#allocation3], 0  ;;  %s602_s0 = inlined_call_operand.hbm [shape: f32[2,8,40], index: 0, kind: input, shape index: {}]   ;;  %s603_s1 = inlined_call_operand.hbm [shape: f32[2,8,40], index: 1, kind: input, shape index: {}]   ;;  %s604_s2 = inlined_call_operand.hbm [shape: f32[2,8,40], index: 2, kind: input, shape index: {}]   ;;  %s605_s3 = inlined_call_operand.vmem [shape: f32[8,8], index: 3, kind: input, shape index: {}]   ;;  %s606_s4 = inlined_call_operand.hbm [shape: f32[2,8,40], index: 4, kind: output, shape index: {}]  }
   0x1   :  { %10 = vsyncpa [#allocation6], 0 }
   0x2   :  { %11 = vsyncpa [#allocation4], 0  ;;  %s483_s15 = smov [#allocation5]   ;;  %s484_s17 = smov [#allocation2]  }
   0x3   :  { %s29_s16 = sshll.u32 %s483_s15, 4  ;;  %s17_s18 = sshll.u32 %s484_s17, 4  ;;  %s30_s16 = int_to_ptr.vmem [resolvable:$true] %s29_s16  ;;  %s522_s18 = int_to_ptr.vmem [resolvable:$true] %s17_s18 }
   0x4   :  { %s389_s21 = scalar_lea.hbm %s603_s1, 256 }
   0x5   :  { %p390_p0 = scmp.ne.s32.totalorder %s603_s1, %s389_s21  ;;  %p393_p1 = scmp.lt.u32.totalorder %s389_s21, %s603_s1 }
   0x7   :  { %p395_p2 = pnand %p393_p1, %p390_p0 }
   0x9   :  { %398 = shalt.err (!%p395_p2)
}
   0xa   :  { %s399_s26 = scalar_lea.vmem %s30_s16, 256  ;;  %p404_p4 = scmp.lt.s32.totalorder %s30_s16, %s30_s16 }
   0xb   :  { %p400_p3 = scmp.ne.s32.totalorder %s30_s16, %s399_s26  ;;  %p405_p5 = scmp.lt.s32.totalorder %s399_s26, %s399_s26 }
   0xd   :  { %p406_p6 = por %p405_p5, %p404_p4 }
   0xf   :  { %p407_p7 = pnand %p406_p6, %p400_p3 }
  0x11   :  { %410 = shalt.err (!%p407_p7)
}
  0x12   :  { %s485_s27 = smov 128   ;;  %s486_s28 = smov 8  }
  0x13   :  { %35 = dma.hbm_to_vmem [thread:$0]  %s603_s1, 256, %s30_s16, [#allocation6], %s485_s27, %s485_s27, %s486_s28  }
  0x14   :  { %s411_s7 = scalar_lea.hbm %s602_s0, 256 }
  0x15   :  { %p412_p8 = scmp.ne.s32.totalorder %s602_s0, %s411_s7  ;;  %p415_p9 = scmp.lt.u32.totalorder %s411_s7, %s602_s0 }
  0x17   :  { %p417_p10 = pnand %p415_p9, %p412_p8 }
  0x19   :  { %420 = shalt.err (!%p417_p10)
}
  0x1a   :  { %s421_s12 = scalar_lea.vmem %s522_s18, 256  ;;  %p426_p12 = scmp.lt.s32.totalorder %s522_s18, %s522_s18 }
  0x1b   :  { %p422_p11 = scmp.ne.s32.totalorder %s522_s18, %s421_s12  ;;  %p427_p13 = scmp.lt.s32.totalorder %s421_s12, %s421_s12 }
  0x1d   :  { %p428_p0 = por %p427_p13, %p426_p12 }
  0x1f   :  { %p429_p1 = pnand %p428_p0, %p422_p11 }
  0x21   :  { %432 = shalt.err (!%p429_p1)
}
  0x22   :  { %23 = dma.hbm_to_vmem [thread:$0]  %s602_s0, 256, %s522_s18, [#allocation3], %s485_s27, %s485_s27, %s486_s28  }
  0x23   :  { %s487_s14 = smov [#allocation7]   ;;  %s433_s19 = scalar_lea.hbm %s604_s2, 256 }
  0x24   :  { %s41_s15 = sshll.u32 %s487_s14, 4  ;;  %p434_p2 = scmp.ne.s32.totalorder %s604_s2, %s433_s19  ;;  %s42_s15 = int_to_ptr.vmem [resolvable:$true] %s41_s15 }
  0x25   :  { %p437_p3 = scmp.lt.u32.totalorder %s433_s19, %s604_s2 }
  0x27   :  { %p439_p4 = pnand %p437_p3, %p434_p2 }
  0x29   :  { %442 = shalt.err (!%p439_p4)
}
  0x2a   :  { %s443_s24 = scalar_lea.vmem %s42_s15, 256  ;;  %p448_p6 = scmp.lt.s32.totalorder %s42_s15, %s42_s15 }
  0x2b   :  { %p444_p5 = scmp.ne.s32.totalorder %s42_s15, %s443_s24  ;;  %p449_p7 = scmp.lt.s32.totalorder %s443_s24, %s443_s24 }
  0x2d   :  { %p450_p8 = por %p449_p7, %p448_p6 }
  0x2f   :  { %p451_p9 = pnand %p450_p8, %p444_p5 }
  0x31   :  { %454 = shalt.err (!%p451_p9)
}
  0x32   :  { %47 = dma.hbm_to_vmem [thread:$0]  %s604_s2, 256, %s42_s15, [#allocation6], %s485_s27, %s485_s27, %s486_s28  }
  0x33   :  { %477 = dma.done.wait [#allocation3], 256  }
  0x34   :  { %478 = vsyncadd [#allocation3], 4294967040 }
  0x35   :  { %479 = dma.done.wait [#allocation6], 512  }
  0x36   :  { %480 = vsyncadd [#allocation6], 4294966784  ;;  %vm64_vm0 = vcmask 326656   ;;  %v72_v0 = vld [vmem:[#allocation5] sm:$0xff]  ;;  %v62_v1 = vld [vmem:[#allocation2] sm:$0xff]  ;;  %v82_v8 = vlaneseq  ;;  %vm116_vm1 = vcmask 64512  }
  0x37   :  { %v73_v2 = vld [vmem:[#allocation5 + $0x8] sm:$0xff]  ;;  %v74_v3 = vsel %vm64_vm0, %v72_v0, 0.0  ;;  %v65_v4 = vsel %vm64_vm0, %v62_v1, 0.0  ;;  %v63_v5 = vld [vmem:[#allocation2 + $0x8] sm:$0xff]  ;;  %v59_v15 = vld [vmem:[%s605_s3] sm:$0xff]  ;;  %v488_v35 = vmov 0  }
  0x38   :  { %75 = vadd.xlane.f32.xlu0 %v74_v3  ;;  %66 = vadd.xlane.f32.xlu1 %v65_v4  ;;  %v77_v6 = vsel %vm64_vm0, %v73_v2, 0.0  ;;  %v68_v7 = vsel %vm64_vm0, %v63_v5, 0.0  ;;  %v83_v9 = vand.u32 127, %v82_v8  ;;  %v85_v10 = vshrl.u32 %v82_v8, 7  ;;  %v342_v57 = vld [vmem:[#allocation7 + $0x9] ss:$0 sm:$0xff] }
  0x39   :  { %369 = vset.pattern.permute.xlu0 %v488_v35  ;;  %370 = vset.pattern.permute.xlu1 %v488_v35  ;;  %v489_v42 = vmov 4   ;;  %v490_v43 = vmov 1   ;;  %v491_v44 = vmov 6   ;;  %v492_v45 = vmov 7   ;;  %v340_v58 = vld [vmem:[#allocation7 + $0x8] ss:$0 sm:$0xff] }
  0x3a   :  { %v86_v11 = vsub.s32 %v83_v9, %v85_v10  ;;  %v493_v46 = vmov 2   ;;  %v494_v47 = vmov 3   ;;  %v495_v48 = vmov 5   ;;  %v344_v59 = vld [vmem:[#allocation7 + $0xa] ss:$0 sm:$0xff]  ;;  %s496_s3 = smov [#allocation8]  }
  0x3b   :  { %v341_v61 = vld [vmem:[#allocation7 + $0x1] ss:$0 sm:$0xff]  ;;  %v346_v0 = vld [vmem:[#allocation7 + $0xb] ss:$0 sm:$0xff]  ;;  %v339_v1 = vld [vmem:[#allocation7] ss:$0 sm:$0xff] }
  0x3c   :  { %78 = vadd.xlane.f32.xlu0 %v77_v6  ;;  %69 = vadd.xlane.f32.xlu1 %v68_v7  ;;  %v343_v3 = vld [vmem:[#allocation7 + $0x2] ss:$0 sm:$0xff]  ;;  %v345_v7 = vld [vmem:[#allocation7 + $0x3] ss:$0 sm:$0xff]  ;;  %s326_s26 = sshll.u32 %s496_s3, 4  ;;  %s327_s26 = int_to_ptr.vmem [resolvable:$true] %s326_s26 }
  0x3d   :  { %s455_s29 = scalar_lea.vmem %s327_s26, 256  ;;  %p460_p11 = scmp.lt.s32.totalorder %s327_s26, %s327_s26 }
  0x3e   :  { %p456_p10 = scmp.ne.s32.totalorder %s327_s26, %s455_s29  ;;  %p461_p12 = scmp.lt.s32.totalorder %s455_s29, %s455_s29 }
  0x40   :  { %p462_p13 = por %p461_p12, %p460_p11 }
  0x42   :  { %p463_p0 = pnand %p462_p13, %p456_p10 }
  0xc5   :  { %v76_v12 = vpop.xlane.xlu0 %75  ;;  %v67_v13 = vpop.xlane.xlu1 %66 }
  0xc6   :  { %v87_v14 = vrot.slane %v76_v12, %v86_v11 }
  0xc8   :  { %v112_v16 = vmul.f32 %v87_v14, %v67_v13  ;;  %v347_v13 = vld [vmem:[#allocation7 + $0x4] ss:$0 sm:$0xff]  ;;  %v348_v14 = vld [vmem:[#allocation7 + $0xc] ss:$0 sm:$0xff] }
  0xc9   :  { %v79_v17 = vpop.xlane.xlu0 %78  ;;  %v70_v18 = vpop.xlane.xlu1 %69 }
  0xca   :  { %v91_v19 = vrot.slane %v79_v17, %v86_v11  ;;  %v114_v20 = vmul.f32 %v112_v16, %v59_v15 }
  0xcc   :  { %v113_v21 = vmul.f32 %v91_v19, %v70_v18  ;;  %v117_v22 = vsel %vm116_vm1, %v114_v20, -inf  ;;  %v350_v18 = vld [vmem:[#allocation7 + $0xd] ss:$0 sm:$0xff] }
  0xcd   :  { %118 = vmax.xlane.f32.xlu0 %v117_v22 }
  0xce   :  { %v115_v23 = vmul.f32 %v113_v21, %v59_v15 }
  0xd0   :  { %v120_v24 = vsel %vm116_vm1, %v115_v23, -inf }
  0xd1   :  { %121 = vmax.xlane.f32.xlu1 %v120_v24 }
 0x15a   :  { %v119_v25 = vpop.xlane.xlu0 %118 }
 0x15b   :  { %v123_v26 = vsub.f32 %v114_v20, %v119_v25  ;;  %v349_v20 = vld [vmem:[#allocation7 + $0x5] ss:$0 sm:$0xff] }
 0x15d   :  { %v125_v27 = vmul.f32 1.442695, %v123_v26 }
 0x15e   :  { %v122_v28 = vpop.xlane.xlu1 %121 }
 0x15f   :  { %381 = vpow2.f32 %v125_v27  ;;  %v124_v29 = vsub.f32 %v115_v23, %v122_v28  ;;  %v352_v28 = vld [vmem:[#allocation7 + $0xe] ss:$0 sm:$0xff] }
 0x161   :  { %v127_v30 = vmul.f32 1.442695, %v124_v29 }
 0x163   :  { %383 = vpow2.f32 %v127_v30  ;;  %v354_v30 = vld [vmem:[#allocation7 + $0xf] ss:$0 sm:$0xff] }
 0x169   :  { %v382_v31 = vpop.eup %381 }
 0x16a   :  { %v129_v32 = vsel %vm116_vm1, %v382_v31, 0.0 }
 0x16b   :  { %130 = vadd.xlane.f32.xlu0 %v129_v32 }
 0x16d   :  { %v384_v33 = vpop.eup %383 }
 0x16e   :  { %v132_v34 = vsel %vm116_vm1, %v384_v33, 0.0 }
 0x16f   :  { %133 = vadd.xlane.f32.xlu1 %v132_v34  ;;  %v351_v34 = vld [vmem:[#allocation7 + $0x6] ss:$0 sm:$0xff] }
 0x1f8   :  { %v131_v36 = vpop.xlane.xlu0 %130 }
 0x1f9   :  { %385 = vrcp.f32 %v131_v36 }
 0x1fc   :  { %v134_v37 = vpop.xlane.xlu1 %133 }
 0x1fd   :  { %387 = vrcp.f32 %v134_v37 }
 0x203   :  { %v386_v38 = vpop.eup %385 }
 0x204   :  { %v137_v39 = vmul.f32 %v386_v38, %v382_v31 }
 0x206   :  { %144 = vperm.xlu0 %369, %v137_v39  }
 0x207   :  { %v388_v40 = vpop.eup %387 }
 0x208   :  { %v138_v41 = vmul.f32 %v388_v40, %v384_v33  ;;  %v353_v40 = vld [vmem:[#allocation7 + $0x7] ss:$0 sm:$0xff] }
 0x20a   :  { %149 = vperm.xlu1 %370, %v138_v41   ;;  %375 = vset.pattern.permute.xlu0 %v489_v42 }
 0x20b   :  { %237 = vperm.xlu0 %375, %v138_v41  }
 0x20e   :  { %371 = vset.pattern.permute.xlu1 %v490_v43 }
 0x20f   :  { %167 = vperm.xlu1 %371, %v137_v39   ;;  %377 = vset.pattern.permute.xlu0 %v491_v44 }
 0x210   :  { %277 = vperm.xlu0 %377, %v137_v39  }
 0x213   :  { %171 = vperm.xlu1 %371, %v138_v41  }
 0x214   :  { %380 = vset.pattern.permute.xlu0 %v492_v45 }
 0x215   :  { %303 = vperm.xlu0 %380, %v138_v41  }
 0x217   :  { %372 = vset.pattern.permute.xlu1 %v493_v46 }
 0x218   :  { %189 = vperm.xlu1 %372, %v137_v39  }
 0x21c   :  { %193 = vperm.xlu1 %372, %v138_v41  }
 0x220   :  { %373 = vset.pattern.permute.xlu1 %v494_v47 }
 0x221   :  { %211 = vperm.xlu1 %373, %v137_v39  }
 0x225   :  { %215 = vperm.xlu1 %373, %v138_v41  }
 0x229   :  { %374 = vset.pattern.permute.xlu1 %v489_v42 }
 0x22a   :  { %233 = vperm.xlu1 %374, %v137_v39  }
 0x22e   :  { %376 = vset.pattern.permute.xlu1 %v495_v48 }
 0x22f   :  { %255 = vperm.xlu1 %376, %v137_v39  }
 0x233   :  { %259 = vperm.xlu1 %376, %v138_v41  }
 0x237   :  { %378 = vset.pattern.permute.xlu1 %v491_v44 }
 0x238   :  { %281 = vperm.xlu1 %378, %v138_v41  }
 0x23c   :  { %379 = vset.pattern.permute.xlu1 %v492_v45 }
 0x23d   :  { %299 = vperm.xlu1 %379, %v137_v39  }
 0x285   :  { %v145_v56 = vpop.permute.xlu0 %144 }
 0x286   :  { %v160_v10 = vmul.f32 %v339_v1, %v145_v56 }
 0x289   :  { %v150_v49 = vpop.permute.xlu1 %149 }
 0x28a   :  { %v238_v63 = vpop.permute.xlu0 %237  ;;  %v161_v2 = vmul.f32 %v340_v58, %v150_v49 }
 0x28b   :  { %v249_v24 = vmul.f32 %v348_v14, %v238_v63 }
 0x28e   :  { %v168_v50 = vpop.permute.xlu1 %167 }
 0x28f   :  { %v182_v5 = vmul.f32 %v341_v61, %v168_v50  ;;  %v278_v16 = vpop.permute.xlu0 %277 }
 0x290   :  { %v292_v41 = vmul.f32 %v351_v34, %v278_v16 }
 0x291   :  { %v184_v15 = vadd.f32 %v182_v5, %v160_v10 }
 0x292   :  { %v172_v51 = vpop.permute.xlu1 %171 }
 0x293   :  { %v183_v62 = vmul.f32 %v342_v57, %v172_v51 }
 0x294   :  { %v304_v31 = vpop.permute.xlu0 %303 }
 0x295   :  { %v185_v6 = vadd.f32 %v183_v62, %v161_v2  ;;  %v315_v38 = vmul.f32 %v354_v30, %v304_v31 }
 0x297   :  { %v190_v52 = vpop.permute.xlu1 %189 }
 0x298   :  { %v204_v11 = vmul.f32 %v343_v3, %v190_v52 }
 0x29a   :  { %v206_v22 = vadd.f32 %v204_v11, %v184_v15 }
 0x29b   :  { %v194_v53 = vpop.permute.xlu1 %193 }
 0x29c   :  { %v205_v4 = vmul.f32 %v344_v59, %v194_v53 }
 0x29e   :  { %v207_v12 = vadd.f32 %v205_v4, %v185_v6 }
 0x2a0   :  { %v212_v54 = vpop.permute.xlu1 %211 }
 0x2a1   :  { %v226_v17 = vmul.f32 %v345_v7, %v212_v54 }
 0x2a3   :  { %v228_v26 = vadd.f32 %v226_v17, %v206_v22 }
 0x2a4   :  { %v216_v55 = vpop.permute.xlu1 %215 }
 0x2a5   :  { %v227_v8 = vmul.f32 %v346_v0, %v216_v55 }
 0x2a7   :  { %v229_v19 = vadd.f32 %v227_v8, %v207_v12 }
 0x2a9   :  { %v234_v60 = vpop.permute.xlu1 %233  ;;  %v251_v29 = vadd.f32 %v249_v24, %v229_v19 }
 0x2aa   :  { %v248_v23 = vmul.f32 %v347_v13, %v234_v60 }
 0x2ac   :  { %v250_v32 = vadd.f32 %v248_v23, %v228_v26 }
 0x2ae   :  { %v256_v9 = vpop.permute.xlu1 %255 }
 0x2af   :  { %v270_v27 = vmul.f32 %v349_v20, %v256_v9 }
 0x2b1   :  { %v272_v37 = vadd.f32 %v270_v27, %v250_v32 }
 0x2b2   :  { %v260_v21 = vpop.permute.xlu1 %259 }
 0x2b3   :  { %v271_v25 = vmul.f32 %v350_v18, %v260_v21  ;;  %v294_v44 = vadd.f32 %v292_v41, %v272_v37 }
 0x2b5   :  { %v273_v35 = vadd.f32 %v271_v25, %v251_v29 }
 0x2b7   :  { %v282_v33 = vpop.permute.xlu1 %281 }
 0x2b8   :  { %v293_v36 = vmul.f32 %v352_v28, %v282_v33 }
 0x2ba   :  { %v295_v39 = vadd.f32 %v293_v36, %v273_v35 }
 0x2bc   :  { %v317_v42 = vadd.f32 %v315_v38, %v295_v39  ;;  %v300_v43 = vpop.permute.xlu1 %299 }
 0x2bd   :  { %v314_v45 = vmul.f32 %v353_v40, %v300_v43 }
 0x2be   :  { %320 = vst.msk [vmem:[#allocation8 + $0x8] sm:$0xff] %vm64_vm0, %v317_v42 }
 0x2bf   :  { %v316_v46 = vadd.f32 %v314_v45, %v294_v44 }
 0x2c1   :  { %319 = vst.msk [vmem:[#allocation8] sm:$0xff] %vm64_vm0, %v316_v46 }
 0x2c2   :  { %466 = shalt.err (!%p463_p0)
}
 0x2c3   :  { %s467_s6 = scalar_lea.hbm %s606_s4, 256 }
 0x2c4   :  { %p468_p1 = scmp.ne.s32.totalorder %s606_s4, %s467_s6  ;;  %p471_p2 = scmp.lt.u32.totalorder %s467_s6, %s606_s4 }
 0x2c6   :  { %p473_p3 = pnand %p471_p2, %p468_p1 }
 0x2c8   :  { %476 = shalt.err (!%p473_p3)
}
 0x2c9   :  { %332 = dma.vmem_to_hbm [thread:$0]  %s327_s26, 256, %s606_s4, [#allocation4], %s485_s27, %s485_s27, %s486_s28  }
 0x2ca   :  { %481 = dma.done.wait [#allocation4], 256  }
 0x2cb   :  { %482 = vsyncadd [#allocation4], 4294967040 }
 0x2cc   :  { %336 = vsyncpa [#allocation3], 1 }
 0x2cd   :  { %337 = vsyncpa [#allocation6], 1 }
 0x2ce   :  { %338 = vsyncpa [#allocation4], 1 }

</bundles_post_ra>
